<compile_context>
chip_gen: v7x
topology: tpu7x:2x2x1
jax: 0.10.0
libtpu: 0.0.40
codegen_flags: <defaults>
</compile_context>

<pallas_src>
import jax
import jax.numpy as jnp
from jax import lax
from jax.experimental import pallas as pl
from jax.experimental.pallas import tpu as pltpu


_SQRT_2_OVER_PI = 0.7978845608028654


def _gelu_tanh(x):
    # tanh-approx GELU: the transcendental goes to the EUP slot (VALU is the binding
    # slot at these matmul sizes).  Numerics differ ~1e-3 from PyTorch's exact-erf GELU.
    return 0.5 * x * (1.0 + jnp.tanh(_SQRT_2_OVER_PI * (x + 0.044715 * x * x * x)))


def resmlp_block_kernel(
    x_ref,       # (TB, P, D) f32  : input tile (residual path stays f32)
    wp_ref,      # (P, P)     bf16 : cross-patch weight
    pk_ref,      # (P+3, D)   f32  : rows [0:P]=bias1, [P]=scale1, [P+1]=bias2, [P+2]=bb1
    w1_ref,      # (D, H)     bf16 : fc1^T with alpha2 folded into rows
    w2_ref,      # (H, D)     bf16 : fc2^T with ls2 folded into columns
    o_ref,       # (TB, P, D) f32
):
    TB, P, D = x_ref.shape
    H = w1_ref.shape[1]

    x32 = x_ref[...]                               # f32 residual path (exact)
    x_bf = x32.astype(jnp.bfloat16)                # bf16 MXU operand

    bias1 = pk_ref[0:P, :]                         # (P, D)
    scale1 = pk_ref[P:P + 1, :]                    # (1, D) = ls1 * alpha1
    bias2 = pk_ref[P + 1:P + 2, :]                 # (1, D) = ls2 * b2_mlp
    bb1 = pk_ref[P + 2:P + 3, :]                   # (1, H) = fc1 bias + beta2 @ fc1^T

    # ---- cross-patch branch: x1 = x + scale1 * (Wp @ x) + bias1 ----
    wp_b = jnp.broadcast_to(wp_ref[...], (TB, P, P))
    mix = jnp.einsum("bpq,bqd->bpd", wp_b, x_bf,
                     preferred_element_type=jnp.float32)       # (TB, P, D) f32
    x1 = x32 + scale1 * mix + bias1

    # ---- channel MLP branch on collapsed (TB*P, D) rows (free leading-dim reshape) ----
    x1_flat = x1.reshape(TB * P, D)
    h = jnp.dot(x1_flat.astype(jnp.bfloat16), w1_ref[...],
                preferred_element_type=jnp.float32) + bb1      # (TB*P, H)
    h = _gelu_tanh(h)
    res2 = jnp.dot(h.astype(jnp.bfloat16), w2_ref[...],
                   preferred_element_type=jnp.float32)         # (TB*P, D)

    out = x1_flat + res2 + bias2
    o_ref[...] = out.reshape(TB, P, D).astype(o_ref.dtype)


# ---------------------------------------------------------------------------
# VMEM accounting and batch-tile selection.
# ---------------------------------------------------------------------------
def _vmem_working_set_bytes(tb, P, D, H):
    io_tiles = 2 * 2 * tb * P * D * 4                               # x + out tiles, f32, double-buffered
    weights = 2 * (P * P * 2 + (P + 3) * D * 4 + D * H * 2 + H * D * 2)  # double-buffered params
    interm = tb * P * (3 * D + H) * 4                               # x1, res2, out, h in f32
    return io_tiles + weights + interm


def _vmem_limit_bytes(tb, P, D, H):
    est = _vmem_working_set_bytes(tb, P, D, H)
    # 2x headroom, >= 8 MiB floor, capped at 32 MiB (safe on v7x's 64 MiB physical VMEM).
    return min(32 << 20, max(2 * est, 8 << 20))


def _pick_tb(B, P, D, H, *, min_grid_steps=4, vmem_budget=8 << 20):
    """Largest divisor of B that fits the VMEM budget and leaves >= min_grid_steps grid
    steps (>= 2 per v7x core so the pipeline actually overlaps DMA with compute)."""
    divisors = [d for d in range(1, B + 1) if B % d == 0]
    fitting = [d for d in divisors if _vmem_working_set_bytes(d, P, D, H) <= vmem_budget]
    good = [d for d in fitting if B // d >= min_grid_steps]
    if good:
        return max(good)
    return max(fitting) if fitting else 1


def resmlp_block(x, fp, *, tb=None, out_dtype=jnp.float32):
    B, P, D = x.shape
    H = fp["w1a"].shape[1]
    assert H == D, "packed parameter layout assumes expansion == 1 (H == D)"
    if tb is None:
        tb = _pick_tb(B, P, D, H)
    assert B % tb == 0, f"batch tile {tb} must divide batch {B}"

    grid_spec = pltpu.PrefetchScalarGridSpec(
        num_scalar_prefetch=0,
        grid=(B // tb,),
        in_specs=[
            pl.BlockSpec((tb, P, D), lambda b: (b, 0, 0)),   # x (f32)
            pl.BlockSpec((P, P), lambda b: (0, 0)),          # wp (bf16)
            pl.BlockSpec((P + 3, D), lambda b: (0, 0)),      # packed small f32 params
            pl.BlockSpec((D, H), lambda b: (0, 0)),          # w1a (bf16)
            pl.BlockSpec((H, D), lambda b: (0, 0)),          # w2s (bf16)
        ],
        out_specs=pl.BlockSpec((tb, P, D), lambda b: (b, 0, 0)),
    )

    return pl.pallas_call(
        resmlp_block_kernel,
        out_shape=jax.ShapeDtypeStruct((B, P, D), out_dtype),
        grid_spec=grid_spec,
        compiler_params=pltpu.CompilerParams(
            dimension_semantics=("parallel",),               # batch blocks -> megacore on v7x
            vmem_limit_bytes=_vmem_limit_bytes(tb, P, D, H),
        ),
    )(x, fp["wp"], fp["packed"], fp["w1a"], fp["w2s"])


# ---------------------------------------------------------------------------
# Parameter construction (PyTorch-style raw params) and one-time folding.
# ---------------------------------------------------------------------------
def init_raw_params(key, num_patches, latent_dim, layerscale_init, expansion=1):
    P, D = num_patches, latent_dim
    H = D * expansion
    k = jax.random.split(key, 7)

    def linear_init(kk, out_f, in_f):
        bound = 1.0 / (in_f ** 0.5)
        kw, kb = jax.random.split(kk)
        w = jax.random.uniform(kw, (out_f, in_f), jnp.float32, -bound, bound)
        b = jax.random.uniform(kb, (out_f,), jnp.float32, -bound, bound)
        return w, b

    wp, bp = linear_init(k[0], P, P)      # Linear(P, P)
    w1, b1 = linear_init(k[1], H, D)      # MLP fc1: (H, D)
    w2, b2 = linear_init(k[2], D, H)      # MLP fc2: (D, H)

    # Note: PyTorch inits affines to identity (ones/zeros); we perturb them here so the
    # folding math is actually exercised by the correctness check.
    return {
        "alpha1": 1.0 + 0.1 * jax.random.normal(k[3], (D,), jnp.float32),
        "beta1": 0.1 * jax.random.normal(k[4], (D,), jnp.float32),
        "wp": wp, "bp": bp,
        "ls1": jnp.full((D,), layerscale_init, jnp.float32),
        "alpha2": 1.0 + 0.1 * jax.random.normal(k[5], (D,), jnp.float32),
        "beta2": 0.1 * jax.random.normal(k[6], (D,), jnp.float32),
        "w1": w1, "b1": b1,
        "w2": w2, "b2": b2,
        "ls2": jnp.full((D,), layerscale_init, jnp.float32),
    }


def fold_params(raw):
    """Fold affine/layerscale vectors into weights & biases; cast matmul operands to bf16."""
    a1, b1a, ls1 = raw["alpha1"], raw["beta1"], raw["ls1"]
    a2, b2a, ls2 = raw["alpha2"], raw["beta2"], raw["ls2"]
    wp, bp = raw["wp"], raw["bp"]
    w1, b1m = raw["w1"], raw["b1"]
    w2, b2m = raw["w2"], raw["b2"]

    H, D = w1.shape
    assert H == D, "packed parameter layout assumes expansion == 1 (H == D)"

    wp_bf = wp.astype(jnp.bfloat16)

    # cross-patch branch:  ls1*res1 = (ls1*a1)*(Wp@x) + ls1*(rowsum(Wp)*beta1 + bp)
    scale1 = ls1 * a1                                                      # (D,)
    # rowsum from the bf16-rounded Wp the kernel actually multiplies with (consistency).
    rowsum = wp_bf.astype(jnp.float32).sum(axis=1)                         # (P,)
    bias1 = ls1[None, :] * (rowsum[:, None] * b1a[None, :] + bp[:, None])  # (P, D)

    # channel MLP branch
    w1_t = w1.T                                # (D, H)
    w1a = a2[:, None] * w1_t                   # alpha2 folded into rows
    bb1 = b1m + b2a @ w1_t                     # (H,)  fc1 bias + beta2 @ fc1^T
    w2s = w2.T * ls2[None, :]                  # ls2 folded into columns   (H, D)
    bias2 = ls2 * b2m                          # (D,)

    packed = jnp.concatenate(
        [bias1, scale1[None, :], bias2[None, :], bb1[None, :]], axis=0
    ).astype(jnp.float32)                      # (P+3, D)

    return {
        "wp": wp_bf,
        "packed": packed,
        "w1a": w1a.astype(jnp.bfloat16),
        "w2s": w2s.astype(jnp.bfloat16),
    }


def resmlp_block_ref(x, raw):
    """Pure-JAX f32 reference mirroring the PyTorch forward (unfolded params, exact GELU)."""
    z1 = raw["alpha1"] * x + raw["beta1"]
    res1 = jnp.einsum("pq,bqd->bpd", raw["wp"], z1) + raw["bp"][None, :, None]
    x1 = x + raw["ls1"] * res1
    z2 = raw["alpha2"] * x1 + raw["beta2"]
    h = jnp.einsum("bpd,hd->bph", z2, raw["w1"]) + raw["b1"]
    h = jax.nn.gelu(h, approximate=False)
    res2 = jnp.einsum("bph,dh->bpd", h, raw["w2"]) + raw["b2"]
    return x1 + raw["ls2"] * res2


if __name__ == "__main__":
    B, P, D = 32, 16, 128          # batch, num_patches, latent_dim (lane-dense D)
    layerscale_init = 0.1

    key = jax.random.PRNGKey(0)
    kx, kp = jax.random.split(key)
    x = jax.random.normal(kx, (B, P, D), jnp.float32)

    raw = init_raw_params(kp, P, D, layerscale_init, expansion=1)
    folded = fold_params(raw)

    out = resmlp_block(x, folded)      # auto tb -> 8, grid=(4,) (2 steps per v7x core)
    out = jax.block_until_ready(out)

    ref = resmlp_block_ref(x, raw)
    assert out.shape == (B, P, D)
    max_err = float(jnp.max(jnp.abs(out - ref)))
    # Tolerance covers bf16 matmul operands (f32 accumulation, exact f32 residual path)
    # plus the tanh-approx vs exact GELU difference (~1e-3).
    assert jnp.allclose(out, ref, atol=2e-2, rtol=2e-2), f"mismatch vs reference, max abs err={max_err}"

    print("KERNEL_OK")
</pallas_src>

<mosaic_0001>
module attributes {stable_mosaic.version = 11 : i64} {
  func.func @resmlp_block_kernel(%arg0: i32, %arg1: memref<8x16x128xf32, #tpu.memory_space<vmem>>, %arg2: memref<16x16xbf16, #tpu.memory_space<vmem>>, %arg3: memref<19x128xf32, #tpu.memory_space<vmem>>, %arg4: memref<128x128xbf16, #tpu.memory_space<vmem>>, %arg5: memref<128x128xbf16, #tpu.memory_space<vmem>>, %arg6: memref<8x16x128xf32, #tpu.memory_space<vmem>>) attributes {dimension_semantics = [#tpu.dimension_semantics<parallel>], iteration_bounds = array<i64: 4>, scalar_prefetch = 0 : i64, scratch_operands = 0 : i64, tpu.core_type = #tpu.core_type<tc>, window_params = [{transform_indices = @transform_0, window_bounds = array<i64: 8, 16, 128>}, {pipeline_mode = #tpu.pipeline_mode<synchronous>, transform_indices = @transform_1, window_bounds = array<i64: 16, 16>}, {pipeline_mode = #tpu.pipeline_mode<synchronous>, transform_indices = @transform_2, window_bounds = array<i64: 19, 128>}, {pipeline_mode = #tpu.pipeline_mode<synchronous>, transform_indices = @transform_3, window_bounds = array<i64: 128, 128>}, {pipeline_mode = #tpu.pipeline_mode<synchronous>, transform_indices = @transform_4, window_bounds = array<i64: 128, 128>}, {transform_indices = @transform_5, window_bounds = array<i64: 8, 16, 128>}]} {
    %c0 = arith.constant 0 : index
    %c0_0 = arith.constant 0 : index
    %c0_1 = arith.constant 0 : index
    %0 = vector.load %arg1[%c0, %c0_0, %c0_1] : memref<8x16x128xf32, #tpu.memory_space<vmem>>, vector<8x16x128xf32>
    %1 = arith.truncf %0 : vector<8x16x128xf32> to vector<8x16x128xbf16>
    %c0_2 = arith.constant 0 : index
    %c0_3 = arith.constant 0 : index
    %2 = vector.load %arg3[%c0_2, %c0_3] : memref<19x128xf32, #tpu.memory_space<vmem>>, vector<16x128xf32>
    %c16 = arith.constant 16 : index
    %c0_4 = arith.constant 0 : index
    %3 = vector.load %arg3[%c16, %c0_4] : memref<19x128xf32, #tpu.memory_space<vmem>>, vector<1x128xf32>
    %c17 = arith.constant 17 : index
    %c0_5 = arith.constant 0 : index
    %4 = vector.load %arg3[%c17, %c0_5] : memref<19x128xf32, #tpu.memory_space<vmem>>, vector<1x128xf32>
    %c18 = arith.constant 18 : index
    %c0_6 = arith.constant 0 : index
    %5 = vector.load %arg3[%c18, %c0_6] : memref<19x128xf32, #tpu.memory_space<vmem>>, vector<1x128xf32>
    %c0_7 = arith.constant 0 : index
    %c0_8 = arith.constant 0 : index
    %6 = vector.load %arg2[%c0_7, %c0_8] : memref<16x16xbf16, #tpu.memory_space<vmem>>, vector<16x16xbf16>
    %7 = vector.shape_cast %6 : vector<16x16xbf16> to vector<1x16x16xbf16>
    %8 = vector.broadcast %7 : vector<1x16x16xbf16> to vector<8x16x16xbf16>
    "tpu.trace_start"() <{level = 10 : i32, message = "bpq,bqd->bpd"}> : () -> ()
    %cst = arith.constant dense<0.000000e+00> : vector<8x16x128xf32>
    %9 = tpu.matmul %8, %1, %cst {dimension_numbers = #tpu.dot_dimension_numbers<[2], [1], [1], [2], [0, 0, 0, 1, 1, 2], [0], [0]>} : vector<8x16x16xbf16>, vector<8x16x128xbf16>, vector<8x16x128xf32> -> vector<8x16x128xf32>
    "tpu.trace_stop"() : () -> ()
    %10 = vector.shape_cast %3 : vector<1x128xf32> to vector<1x1x128xf32>
    %11 = vector.broadcast %10 : vector<1x1x128xf32> to vector<8x16x128xf32>
    %12 = arith.mulf %11, %9 : vector<8x16x128xf32>
    %13 = arith.addf %0, %12 : vector<8x16x128xf32>
    %14 = vector.shape_cast %2 : vector<16x128xf32> to vector<1x16x128xf32>
    %15 = vector.broadcast %14 : vector<1x16x128xf32> to vector<8x16x128xf32>
    %16 = arith.addf %13, %15 : vector<8x16x128xf32>
    %17 = vector.shape_cast %16 : vector<8x16x128xf32> to vector<128x128xf32>
    %18 = arith.truncf %17 : vector<128x128xf32> to vector<128x128xbf16>
    %c0_9 = arith.constant 0 : index
    %c0_10 = arith.constant 0 : index
    %19 = vector.load %arg4[%c0_9, %c0_10] : memref<128x128xbf16, #tpu.memory_space<vmem>>, vector<128x128xbf16>
    %cst_11 = arith.constant dense<0.000000e+00> : vector<128x128xf32>
    %20 = tpu.matmul %18, %19, %cst_11 {dimension_numbers = #tpu.dot_dimension_numbers<[1], [0], [0], [1], [0, 0, 1, 1], [], []>} : vector<128x128xbf16>, vector<128x128xbf16>, vector<128x128xf32> -> vector<128x128xf32>
    %21 = vector.broadcast %5 : vector<1x128xf32> to vector<128x128xf32>
    %22 = arith.addf %20, %21 : vector<128x128xf32>
    %cst_12 = arith.constant 5.000000e-01 : f32
    %23 = vector.broadcast %cst_12 : f32 to vector<128x128xf32>
    %24 = arith.mulf %23, %22 : vector<128x128xf32>
    %cst_13 = arith.constant 4.471500e-02 : f32
    %25 = vector.broadcast %cst_13 : f32 to vector<128x128xf32>
    %26 = arith.mulf %25, %22 : vector<128x128xf32>
    %27 = arith.mulf %26, %22 : vector<128x128xf32>
    %28 = arith.mulf %27, %22 : vector<128x128xf32>
    %29 = arith.addf %22, %28 : vector<128x128xf32>
    %cst_14 = arith.constant 0.797884583 : f32
    %30 = vector.broadcast %cst_14 : f32 to vector<128x128xf32>
    %31 = arith.mulf %30, %29 : vector<128x128xf32>
    %32 = math.tanh %31 : vector<128x128xf32>
    %cst_15 = arith.constant 1.000000e+00 : f32
    %33 = vector.broadcast %cst_15 : f32 to vector<128x128xf32>
    %34 = arith.addf %33, %32 : vector<128x128xf32>
    %35 = arith.mulf %24, %34 : vector<128x128xf32>
    %36 = arith.truncf %35 : vector<128x128xf32> to vector<128x128xbf16>
    %c0_16 = arith.constant 0 : index
    %c0_17 = arith.constant 0 : index
    %37 = vector.load %arg5[%c0_16, %c0_17] : memref<128x128xbf16, #tpu.memory_space<vmem>>, vector<128x128xbf16>
    %cst_18 = arith.constant dense<0.000000e+00> : vector<128x128xf32>
    %38 = tpu.matmul %36, %37, %cst_18 {dimension_numbers = #tpu.dot_dimension_numbers<[1], [0], [0], [1], [0, 0, 1, 1], [], []>} : vector<128x128xbf16>, vector<128x128xbf16>, vector<128x128xf32> -> vector<128x128xf32>
    %39 = arith.addf %17, %38 : vector<128x128xf32>
    %40 = vector.broadcast %4 : vector<1x128xf32> to vector<128x128xf32>
    %41 = arith.addf %39, %40 : vector<128x128xf32>
    %42 = vector.shape_cast %41 : vector<128x128xf32> to vector<8x16x128xf32>
    %c0_19 = arith.constant 0 : index
    %c0_20 = arith.constant 0 : index
    %c0_21 = arith.constant 0 : index
    %43 = vector.load %arg6[%c0_19, %c0_20, %c0_21] : memref<8x16x128xf32, #tpu.memory_space<vmem>>, vector<8x16x128xf32>
    tpu.vector_store %arg6[%c0_19, %c0_20, %c0_21], %42 {strides = array<i32>} : memref<8x16x128xf32, #tpu.memory_space<vmem>>, vector<8x16x128xf32>,
    return
  }
  func.func @transform_0(%arg0: i32) -> (i32, i32, i32) {
    %c0_i32 = arith.constant 0 : i32
    %c0_i32_0 = arith.constant 0 : i32
    %c0_i32_1 = arith.constant 0 : i32
    return %arg0, %c0_i32, %c0_i32_0 : i32, i32, i32
  }
  func.func @transform_1(%arg0: i32) -> (i32, i32) {
    %c0_i32 = arith.constant 0 : i32
    %c0_i32_0 = arith.constant 0 : i32
    %c0_i32_1 = arith.constant 0 : i32
    return %c0_i32, %c0_i32_0 : i32, i32
  }
  func.func @transform_2(%arg0: i32) -> (i32, i32) {
    %c0_i32 = arith.constant 0 : i32
    %c0_i32_0 = arith.constant 0 : i32
    %c0_i32_1 = arith.constant 0 : i32
    return %c0_i32, %c0_i32_0 : i32, i32
  }
  func.func @transform_3(%arg0: i32) -> (i32, i32) {
    %c0_i32 = arith.constant 0 : i32
    %c0_i32_0 = arith.constant 0 : i32
    %c0_i32_1 = arith.constant 0 : i32
    return %c0_i32, %c0_i32_0 : i32, i32
  }
  func.func @transform_4(%arg0: i32) -> (i32, i32) {
    %c0_i32 = arith.constant 0 : i32
    %c0_i32_0 = arith.constant 0 : i32
    %c0_i32_1 = arith.constant 0 : i32
    return %c0_i32, %c0_i32_0 : i32, i32
  }
  func.func @transform_5(%arg0: i32) -> (i32, i32, i32) {
    %c0_i32 = arith.constant 0 : i32
    %c0_i32_0 = arith.constant 0 : i32
    %c0_i32_1 = arith.constant 0 : i32
    return %arg0, %c0_i32, %c0_i32_0 : i32, i32, i32
  }
}

</mosaic_0001>

<bundles_post_ra>
// kernel: tpu_custom_call.1
= control target key start
LH: loop header
LB: loop body
LE: loop exit
PB: predicated region body
PF: predicated region fallthrough
CT: control target
= control target key end

     0   :  { %10 = vsyncpa [#allocation3], 0  ;;  %s2651_s0 = inlined_call_operand.hbm [shape: f32[32,16,128], index: 0, kind: input, shape index: {}]   ;;  %s2652_s1 = inlined_call_operand.hbm [shape: bf16[16,16], index: 1, kind: input, shape index: {}]   ;;  %s2653_s2 = inlined_call_operand.hbm [shape: f32[19,128], index: 2, kind: input, shape index: {}]   ;;  %s2654_s3 = inlined_call_operand.hbm [shape: bf16[128,128], index: 3, kind: input, shape index: {}]   ;;  %s2655_s4 = inlined_call_operand.hbm [shape: bf16[128,128], index: 4, kind: input, shape index: {}]   ;;  %s2656_s5 = inlined_call_operand.hbm [shape: f32[32,16,128], index: 5, kind: output, shape index: {}]  }
   0x1   :  { %12 = vsyncpa [#allocation3 + $0x1], 0 }
   0x2   :  { %13 = vsyncpa [#allocation6], 0 }
   0x3   :  { %14 = vsyncpa [#allocation9], 0 }
   0x4   :  { %15 = vsyncpa [#allocation4], 0 }
   0x5   :  { %17 = vsyncpa [#allocation4 + $0x1], 0  ;;  %s2011_s18 = smov 0   ;;  %s2013_s19 = smov 0  }
   0x6   :  { %s2015_s20 = smov 0   ;;  %s2017_s21 = smov 0  }
   0x7 LB: > { %s2032_s22 = sadd.s32 4294967295, %s1965_s21   ;;  %s1389_s23 = sadd.s32 4294967294, %s1965_s21   ;;  %s1965_s21 = sphi %s2017_s21, %s2680_s21   ;;  %s1961_s20 = sphi %s2015_s20, %s2679_s20   ;;  %s1957_s19 = sphi %s2013_s19, %s2678_s19   ;;  %s1953_s18 = sphi %s2011_s18, %s2677_s18  }
   0x8   : > { %p43_p0 = scmp.ne.s32.totalorder %s1957_s19, %s1953_s18  ;;  %p2657_p1 = scmp.eq.s32.totalorder %s2032_s22, 0 }
   0x9   : > { %p157_p3 = scmp.eq.s32.totalorder %s1389_s23, 3  ;;  %p1390_p5 = scmp.ge.s32.totalorder %s1965_s21, 1 }
   0xa   : > { %p2041_p4 = por %p2657_p1, %p43_p0  ;;  %p164_p7 = scmp.lt.s32.totalorder %s1965_s21, 5 }
   0xb   : > { %p2046_p6 = por %p157_p3, %p43_p0  ;;  %s1967_s27 = smov [#allocation5]  }
   0xc   : > { %s2661_s24 = scalar_select %p2041_p4, 1, 0 }
   0xd   : > { %s2662_s25 = scalar_select %p2046_p6, 1, 0 }
   0xe   : > { %p2051_p8 = pnand %p1390_p5, %p164_p7  ;;  %s176_s28 = sshll.u32 %s1967_s27, 4  ;;  %s2055_s28 = int_to_ptr.vmem [resolvable:$true] %s176_s28 }
   0xf   : > { %s1968_s30 = smov [#allocation8]   ;;  %s1969_s7 = smov [#allocation7]  }
  0x10   : > { %s2663_s26 = scalar_select %p2051_p8, 1, 0 }
  0x11   : > { %p1625_p9 = pneg %p2051_p8  ;;  %s202_s6 = sshll.u32 %s1968_s30, 4  ;;  %s2065_s6 = int_to_ptr.vmem [resolvable:$true] %s202_s6 }
  0x12   : > { %s2067_s8 = sshll.u32 %s1969_s7, 4  ;;  %s1749_s11 = scalar_lea.hbm %s2652_s1, 128  ;;  %s190_s8 = int_to_ptr.vmem [resolvable:$true] %s2067_s8 }
  0x13   : > { %p2061_p10 = pnand %p1625_p9, %p2657_p1  ;;  %p1750_p11 = scmp.ne.s32.totalorder %s2652_s1, %s1749_s11 }
  0x14   : > { %p1756_p3 = scmp.lt.u32.totalorder %s1749_s11, %s2652_s1 }
  0x15   : > { %p2077_p12 = pneg %p2061_p10 }
  0x17   : > { %p1752_p13 = pnand %p2077_p12, %p1750_p11 }
  0x19   : > { %p1753_p0 = pneg %p1752_p13 }
  0x1b   : > { %p1758_p5 = pnand %p1756_p3, %p1753_p0 }
  0x1d   : > { %1761 = shalt.err (!%p1758_p5)
}
  0x1e   : > { %s1762_s17 = scalar_lea.vmem %s2055_s28, 128  ;;  %p1770_p2 = scmp.lt.s32.totalorder %s2055_s28, %s2055_s28 }
  0x1f   : > { %p1763_p7 = scmp.ne.s32.totalorder %s2055_s28, %s1762_s17  ;;  %p1771_p6 = scmp.lt.s32.totalorder %s1762_s17, %s1762_s17 }
  0x21   : > { %p1765_p9 = pnand %p1763_p7, %p2077_p12  ;;  %p1772_p11 = por %p1771_p6, %p1770_p2 }
  0x23   : > { %p1766_p1 = pneg %p1765_p9 }
  0x25   : > { %p1773_p13 = pnand %p1772_p11, %p1766_p1 }
  0x27   : > { %1776 = shalt.err (!%p1773_p13)
}
  0x28   : > { %s2660_s23 = smov 64   ;;  %s1971_s27 = smov 4  }
  0x29   : > { %1628 = dma.hbm_to_vmem [thread:$0]  (!%p2061_p10), %s2652_s1, 128, %s2055_s28, [#allocation6], %s2660_s23, %s2660_s23, %s1971_s27  }
  0x2a   : > { %s1777_s11 = scalar_lea.hbm %s2654_s3, 1024 }
  0x2b   : > { %p1778_p1 = scmp.ne.s32.totalorder %s2654_s3, %s1777_s11  ;;  %p1784_p0 = scmp.lt.u32.totalorder %s1777_s11, %s2654_s3 }
  0x2d   : > { %p1780_p2 = pnand %p1778_p1, %p2077_p12 }
  0x2f   : > { %p1781_p6 = pneg %p1780_p2 }
  0x31   : > { %p1786_p3 = pnand %p1784_p0, %p1781_p6 }
  0x33   : > { %1789 = shalt.err (!%p1786_p3)
}
  0x34   : > { %s1790_s28 = scalar_lea.vmem %s2065_s6, 1024  ;;  %p1798_p11 = scmp.lt.s32.totalorder %s2065_s6, %s2065_s6 }
  0x35   : > { %p1791_p5 = scmp.ne.s32.totalorder %s2065_s6, %s1790_s28  ;;  %p1799_p13 = scmp.lt.s32.totalorder %s1790_s28, %s1790_s28 }
  0x37   : > { %p1793_p7 = pnand %p1791_p5, %p2077_p12  ;;  %p1800_p1 = por %p1799_p13, %p1798_p11 }
  0x39   : > { %p1794_p9 = pneg %p1793_p7 }
  0x3b   : > { %p1801_p2 = pnand %p1800_p1, %p1794_p9 }
  0x3d   : > { %1804 = shalt.err (!%p1801_p2)
}
  0x3e   : > { %1634 = dma.hbm_to_vmem [thread:$0]  (!%p2061_p10), %s2654_s3, 1024, %s2065_s6, [#allocation9], %s2660_s23, %s2660_s23, %s1971_s27  }
  0x3f   : > { %s1805_s10 = scalar_lea.hbm %s2653_s2, 384 }
  0x40   : > { %p1806_p6 = scmp.ne.s32.totalorder %s2653_s2, %s1805_s10  ;;  %p1812_p5 = scmp.lt.u32.totalorder %s1805_s10, %s2653_s2 }
  0x42   : > { %p1808_p0 = pnand %p1806_p6, %p2077_p12 }
  0x44   : > { %p1809_p3 = pneg %p1808_p0 }
  0x46   : > { %p1814_p7 = pnand %p1812_p5, %p1809_p3 }
  0x48   : > { %1817 = shalt.err (!%p1814_p7)
}
  0x49   : > { %s1818_s16 = scalar_lea.vmem %s190_s8, 384  ;;  %p1826_p1 = scmp.lt.s32.totalorder %s190_s8, %s190_s8 }
  0x4a   : > { %p1819_p9 = scmp.ne.s32.totalorder %s190_s8, %s1818_s16  ;;  %p1827_p2 = scmp.lt.s32.totalorder %s1818_s16, %s1818_s16 }
  0x4c   : > { %p1821_p11 = pnand %p1819_p9, %p2077_p12  ;;  %p1828_p4 = por %p1827_p2, %p1826_p1 }
  0x4e   : > { %p1822_p13 = pneg %p1821_p11 }
  0x50   : > { %p1829_p8 = pnand %p1828_p4, %p1822_p13 }
  0x52   : > { %1832 = shalt.err (!%p1829_p8)
}
  0x53   : > { %s1972_s6 = smov 128   ;;  %s1973_s28 = smov 8  }
  0x54   : > { %1631 = dma.hbm_to_vmem [thread:$0]  (!%p2061_p10), %s2653_s2, 384, %s190_s8, [#allocation6], %s1972_s6, %s1972_s6, %s1973_s28  }
  0x55   : > { %s1974_s7 = smov [#allocation10]   ;;  %s1833_s12 = scalar_lea.hbm %s2655_s4, 1024 }
  0x56   : > { %s215_s9 = sshll.u32 %s1974_s7, 4  ;;  %p1834_p4 = scmp.ne.s32.totalorder %s2655_s4, %s1833_s12  ;;  %s216_s9 = int_to_ptr.vmem [resolvable:$true] %s215_s9 }
  0x57   : > { %p1840_p0 = scmp.lt.u32.totalorder %s1833_s12, %s2655_s4 }
  0x58   : > { %p1836_p8 = pnand %p1834_p4, %p2077_p12 }
  0x5a   : > { %p1837_p6 = pneg %p1836_p8 }
  0x5c   : > { %p1842_p3 = pnand %p1840_p0, %p1837_p6 }
  0x5e   : > { %1845 = shalt.err (!%p1842_p3)
}
  0x5f   : > { %s1846_s8 = scalar_lea.vmem %s216_s9, 1024  ;;  %p1854_p11 = scmp.lt.s32.totalorder %s216_s9, %s216_s9 }
  0x60   : > { %p1847_p5 = scmp.ne.s32.totalorder %s216_s9, %s1846_s8  ;;  %p1855_p13 = scmp.lt.s32.totalorder %s1846_s8, %s1846_s8 }
  0x62   : > { %p1849_p7 = pnand %p1847_p5, %p2077_p12  ;;  %p1856_p1 = por %p1855_p13, %p1854_p11 }
  0x64   : > { %p1850_p9 = pneg %p1849_p7 }
  0x66   : > { %p1857_p2 = pnand %p1856_p1, %p1850_p9 }
  0x68   : > { %1860 = shalt.err (!%p1857_p2)
}
  0x69   : > { %s2666_s17 = smov 64   ;;  %s2171_s14 = sadd.s32 1, %s1965_s21  }
  0x6a   : > { %1637 = dma.hbm_to_vmem [thread:$0]  (!%p2061_p10), %s2655_s4, 1024, %s216_s9, [#allocation9], %s2666_s17, %s2666_s17, %s1971_s27  }
  0x6b   : > { %s30_s29 = sadd.s32 1, %s1961_s20  ;;  %s27_s7 = ssub.s32 %s1965_s21, %s2171_s14 }
  0x6c   : > { %p37_p12 = scmp.ne.s32.totalorder %s1961_s20, %s1957_s19  ;;  %p28_p4 = scmp.eq.s32.totalorder %s27_s7, 0 }
  0x6d   : > { %p38_p8 = scmp.eq.s32.totalorder %s1965_s21, 0  ;;  %p2667_p6 = scmp.eq.s32.totalorder %s2032_s22, 3 }
  0x6e   : > { %p1650_p3 = scmp.lt.s32.totalorder %s1965_s21, 4  ;;  %s229_s12 = sand.u32 1, %s1961_s20  }
  0x6f   : > { %p2181_p0 = por %p2667_p6, %p37_p12  ;;  %p39_p5 = por %p38_p8, %p37_p12 }
  0x70   : > { %s2187_s11 = scalar_select %p28_p4, %s1961_s20, %s30_s29  }
  0x71   : > { %s1396_s13 = sshll.u32 %s229_s12, 7  ;;  %s1442_s27 = sshll.u32 %s1965_s21, 11 }
  0x72   : > { %s2194_s16 = scalar_lea.hbm %s2651_s0, %s1442_s27  ;;  %s233_s8 = scalar_lea.vmem [#allocation2], %s1396_s13 }
  0x73   : > { %s241_s17 = sshll.u32 %s233_s8, 4  ;;  %p2198_p10 = pnand %p1650_p3, %p39_p5  ;;  %s2196_s17 = int_to_ptr.vmem [resolvable:$true] %s241_s17 }
  0x74   : > { %s2202_s30 = scalar_lea.sflag [#allocation3], %s229_s12  ;;  %s1861_s29 = scalar_lea.hbm %s2194_s16, 2048 }
  0x75   : > { %p1862_p7 = scmp.ne.s32.totalorder %s2194_s16, %s1861_s29  ;;  %p1863_p9 = pneg %p2198_p10 }
  0x76   : > { %s1866_s27 = scalar_lea.hbm %s2651_s0, 8192  ;;  %p1867_p1 = scmp.lt.u32.totalorder %s2194_s16, %s2651_s0 }
  0x77   : > { %p1864_p11 = pnand %p1863_p9, %p1862_p7  ;;  %p1868_p2 = scmp.lt.u32.totalorder %s1866_s27, %s1861_s29 }
  0x78   : > { %p1870_p4 = scmp.lt.u32.totalorder %s1861_s29, %s2194_s16 }
  0x79   : > { %p1865_p13 = pneg %p1864_p11  ;;  %p1869_p12 = por %p1868_p2, %p1867_p1 }
  0x7b   : > { %p1871_p8 = por %p1870_p4, %p1869_p12 }
  0x7d   : > { %p1872_p6 = pnand %p1871_p8, %p1865_p13 }
  0x7f   : > { %1875 = shalt.err (!%p1872_p6)
}
  0x80   : > { %s1876_s12 = scalar_lea.vmem %s2196_s17, 2048  ;;  %s1975_s8 = smov [#allocation2]  }
  0x81   : > { %p1877_p3 = scmp.ne.s32.totalorder %s2196_s17, %s1876_s12  ;;  %s1881_s7 = sshll.u32 %s1975_s8, 4  ;;  %s1882_s7 = int_to_ptr.vmem [resolvable:$false] %s1881_s7 }
  0x82   : > { %s1883_s13 = scalar_lea.vmem %s1882_s7, 4096  ;;  %p1884_p11 = scmp.lt.s32.totalorder %s2196_s17, %s1882_s7 }
  0x83   : > { %p1879_p5 = pnand %p1877_p3, %p1863_p9  ;;  %p1885_p1 = scmp.lt.s32.totalorder %s1883_s13, %s1876_s12 }
  0x85   : > { %p1880_p7 = pneg %p1879_p5  ;;  %p1886_p2 = por %p1885_p1, %p1884_p11 }
  0x87   : > { %p1887_p12 = pnand %p1886_p2, %p1880_p7 }
  0x89   : > { %1890 = shalt.err (!%p1887_p12)
}
  0x8a   : > { %1641 = dma.hbm_to_vmem [thread:$0]  (!%p2198_p10), %s2194_s16, 2048, %s2196_s17, %s2202_s30, %s1972_s6, %s1972_s6, %s1973_s28  }
  0x8b   : > { %p2670_p9 = scmp.ne.s32.totalorder %s2663_s26, 0 }
  0x8c   : > { %s2236_s29 = sand.u32 (!%p2670_p9), 1, %s1957_s19   ;;  %p2671_p13 = scmp.ne.s32.totalorder (!%p2670_p9), %s2661_s24, 0 }
  0x8d   : > { %253 = sbr.rel (%p2670_p9) target bundleno = 893 (0x37d), region = 40  ;;  %s1401_s27 = sshll.u32 (!%p2670_p9), %s2236_s29, 7 }
  0x8e   : > { %s256_s9 = scalar_lea.sflag (!%p2670_p9), [#allocation3], %s2236_s29  ;;  %s2242_s23 = scalar_lea.vmem (!%p2670_p9), [#allocation2], %s1401_s27 }
  0x94   : > { %1936 = dma.done.wait (%p2671_p13), %s256_s9, 2048  }
  0x95   : > { %1938 = vsyncadd (%p2671_p13), %s256_s9, 4294965248  ;;  %p2672_p10 = scmp.eq.s32.totalorder %s2032_s22, 0 }
  0x97   : > { %1940 = dma.done.wait (%p2672_p10), [#allocation6], 512   ;;  %p2673_p4 = pmov %p2672_p10 }
  0x99   : > { %1942 = vsyncadd (%p2673_p4), [#allocation6], 4294966784  ;;  %p2674_p8 = pmov %p2673_p4 }
  0x9a   : > { %p2675_p6 = pmov %p2673_p4 }
  0x9b   : > { %1944 = dma.done.wait (%p2674_p8), [#allocation9], 2048  }
  0x9c   : > { %1946 = vsyncadd (%p2675_p6), [#allocation9], 4294965248  ;;  %v1976_v0 = vmov 0.0   ;;  %vm1977_vm0 = vmmov 0   ;;  %v2259_v1 = vld [vmem:[%s2242_s23] sm:$0xff]  ;;  %v2262_v2 = vld [vmem:[%s2242_s23 + $0x8] sm:$0xff] }
  0x9d   : > { %1493 = vmatprep.subr.bf16.mxu0 %v1976_v0  ;;  %1499 = vmatprep.subr.bf16.mxu1 %v1976_v0  ;;  %v2265_v3 = vld [vmem:[%s2242_s23 + $0x10] sm:$0xff]  ;;  %v321_v4 = vpack.c.bf16 %v2262_v2, %v2259_v1  ;;  %v2270_v5 = vld [vmem:[%s2242_s23 + $0x18] sm:$0xff]  ;;  %v1700_v7 = vld [vmem:[#allocation5] sm:$0xff]   ;;  %vm341_vm1 = vcmask 130048   ;;  %s2557_s24 = scalar_lea.vmem [#allocation11], %s1401_s27  ;;  %s1444_s26 = sshll.u32 %s2032_s22, 11 }
  0x9e   : > { %1495 = vmatprep.mubr.msk.bf16.mxu0 %vm1977_vm0, %v1976_v0  ;;  %1501 = vmatprep.mubr.msk.bf16.mxu1 %vm1977_vm0, %v1976_v0  ;;  %v322_v6 = vpack.c.bf16 %v2270_v5, %v2265_v3  ;;  %v2275_v8 = vld [vmem:[%s2242_s23 + $0x20] sm:$0xff]  ;;  %v2278_v9 = vld [vmem:[%s2242_s23 + $0x28] sm:$0xff]  ;;  %v2283_v11 = vld [vmem:[%s2242_s23 + $0x30] sm:$0xff]  ;;  %s1278_s6 = sshll.u32 %s2557_s24, 4  ;;  %s2602_s17 = scalar_lea.hbm %s2656_s5, %s1444_s26  ;;  %s2604_s6 = int_to_ptr.vmem [resolvable:$true] %s1278_s6 }
  0x9f   : > { %1494 = vmatpush3.bf16.msra.mxu0 %v321_v4  ;;  %v323_v10 = vpack.c.bf16 %v2278_v9, %v2275_v8  ;;  %v2286_v12 = vld [vmem:[%s2242_s23 + $0x38] sm:$0xff]  ;;  %v2292_v14 = vld [vmem:[%s2242_s23 + $0x40] sm:$0xff]  ;;  %v2296_v15 = vld [vmem:[%s2242_s23 + $0x48] sm:$0xff]  ;;  %s1264_s22 = scalar_lea.sflag [#allocation4], %s2236_s29  ;;  %s1891_s30 = scalar_lea.vmem %s2604_s6, 2048 }
  0xa0   : > { %1500 = vmatpush3.bf16.msra.mxu1 %v322_v6  ;;  %1505 = vmatprep.subr.bf16.mxu0 %v1976_v0  ;;  %v324_v13 = vpack.c.bf16 %v2286_v12, %v2283_v11  ;;  %v2300_v16 = vld [vmem:[%s2242_s23 + $0x50] sm:$0xff]  ;;  %v2304_v17 = vld [vmem:[%s2242_s23 + $0x58] sm:$0xff]  ;;  %v325_v18 = vpack.c.bf16 %v2296_v15, %v2292_v14  ;;  %v2312_v20 = vld [vmem:[%s2242_s23 + $0x60] sm:$0xff]  ;;  %p1892_p3 = scmp.ne.s32.totalorder %s2604_s6, %s1891_s30  ;;  %s1978_s15 = smov [#allocation11]  }
  0xa1   : > { %1511 = vmatprep.subr.bf16.mxu1 %v1976_v0  ;;  %v326_v19 = vpack.c.bf16 %v2304_v17, %v2300_v16  ;;  %v2315_v21 = vld [vmem:[%s2242_s23 + $0x68] sm:$0xff]  ;;  %v2319_v22 = vld [vmem:[%s2242_s23 + $0x70] sm:$0xff]  ;;  %v2322_v23 = vld [vmem:[%s2242_s23 + $0x78] sm:$0xff]  ;;  %s1895_s12 = sshll.u32 %s1978_s15, 4  ;;  %s1896_s12 = int_to_ptr.vmem [resolvable:$false] %s1895_s12 }
  0xa2   : > { %1496 = vmatmul.mubr.msk.bf16.vlgmr.msra.gmra.mrb[0].mxu0 %vm341_vm1, %v1700_v7  ;;  %v327_v24 = vpack.c.bf16 %v2315_v21, %v2312_v20  ;;  %v328_v25 = vpack.c.bf16 %v2322_v23, %v2319_v22  ;;  %v1701_v26 = vld [vmem:[#allocation8] sm:$0xff]   ;;  %v1702_v27 = vld [vmem:[#allocation8 + $0x8] sm:$0xff]   ;;  %v1703_v28 = vld [vmem:[#allocation8 + $0x10] sm:$0xff]   ;;  %p1893_p5 = pnand %p1892_p3, %p2181_p0  ;;  %s1897_s8 = scalar_lea.vmem %s1896_s12, 4096 }
  0xa3   : > { %1502 = vmatmul.mubr.msk.bf16.vlgmr.msra.gmra.mrb[0].mxu1 %vm341_vm1, %v1700_v7  ;;  %1506 = vmatpush3.bf16.msra.mxu0 %v323_v10  ;;  %v1704_v29 = vld [vmem:[#allocation8 + $0x18] sm:$0xff]   ;;  %v1705_v30 = vld [vmem:[#allocation8 + $0x20] sm:$0xff]   ;;  %v1706_v31 = vld [vmem:[#allocation8 + $0x28] sm:$0xff]   ;;  %p1898_p11 = scmp.lt.s32.totalorder %s2604_s6, %s1896_s12  ;;  %p1899_p1 = scmp.lt.s32.totalorder %s1897_s8, %s1891_s30 }
  0xa4   : > { %1512 = vmatpush3.bf16.msra.mxu1 %v324_v13  ;;  %1507 = vmatprep.mubr.msk.bf16.mxu0 %vm1977_vm0, %v1976_v0  ;;  %v1707_v32 = vld [vmem:[#allocation8 + $0x30] sm:$0xff]   ;;  %v1708_v33 = vld [vmem:[#allocation8 + $0x38] sm:$0xff]   ;;  %v2340_v42 = vld [vmem:[#allocation7] sm:$0xff]  ;;  %p1894_p7 = pneg %p1893_p5 }
  0xa5   : > { %1513 = vmatprep.mubr.msk.bf16.mxu1 %vm1977_vm0, %v1976_v0  ;;  %1517 = vmatprep.subr.bf16.mxu0 %v1976_v0  ;;  %v2336_v34 = vld [vmem:[#allocation7 + $0x10] ss:$0 sm:$0xff]  ;;  %v2345_v48 = vld [vmem:[#allocation7 + $0x8] sm:$0xff]  ;;  %p1900_p2 = por %p1899_p1, %p1898_p11 }
  0xa6   : > { %1523 = vmatprep.subr.bf16.mxu1 %v1976_v0 }
  0xa7   : > { %p1901_p12 = pnand %p1900_p2, %p1894_p7 }
  0xaa   : > { %1508 = vmatmul.mubr.msk.bf16.vlgmr.msra.gmra.mrb[4].mxu0 %vm341_vm1, %v1700_v7 }
  0xab   : > { %1514 = vmatmul.mubr.msk.bf16.vlgmr.msra.gmra.mrb[4].mxu1 %vm341_vm1, %v1700_v7  ;;  %1518 = vmatpush3.bf16.msra.mxu0 %v325_v18 }
  0xac   : > { %1524 = vmatpush3.bf16.msra.mxu1 %v326_v19  ;;  %1519 = vmatprep.mubr.msk.bf16.mxu0 %vm1977_vm0, %v1976_v0 }
  0xad   : > { %1525 = vmatprep.mubr.msk.bf16.mxu1 %vm1977_vm0, %v1976_v0  ;;  %1529 = vmatprep.subr.bf16.mxu0 %v1976_v0 }
  0xae   : > { %1535 = vmatprep.subr.bf16.mxu1 %v1976_v0 }
  0xb2   : > { %1520 = vmatmul.mubr.msk.bf16.vlgmr.msra.gmra.mrb[8].mxu0 %vm341_vm1, %v1700_v7 }
  0xb3   : > { %1526 = vmatmul.mubr.msk.bf16.vlgmr.msra.gmra.mrb[8].mxu1 %vm341_vm1, %v1700_v7  ;;  %1530 = vmatpush3.bf16.msra.mxu0 %v327_v24 }
  0xb4   : > { %1536 = vmatpush3.bf16.msra.mxu1 %v328_v25  ;;  %1531 = vmatprep.mubr.msk.bf16.mxu0 %vm1977_vm0, %v1976_v0 }
  0xb5   : > { %1537 = vmatprep.mubr.msk.bf16.mxu1 %vm1977_vm0, %v1976_v0  ;;  %1541 = vmatprep.subr.bf16.mxu0 %v1701_v26 }
  0xba   : > { %1532 = vmatmul.mubr.msk.bf16.vlgmr.msra.gmra.mrb[12].mxu0 %vm341_vm1, %v1700_v7 }
  0xbb   : > { %1538 = vmatmul.mubr.msk.bf16.vlgmr.msra.gmra.mrb[12].mxu1 %vm341_vm1, %v1700_v7  ;;  %1542 = vmatpush3.bf16.msra.mxu0 %v1701_v26 }
  0xbc   : > { %1543 = vmatprep.subr.bf16.mxu0 %v1702_v27 }
  0xbf   : > { %1544 = vmatpush3.bf16.msra.mxu0 %v1702_v27 }
  0xc0   : > { %1545 = vmatprep.subr.bf16.mxu0 %v1703_v28 }
  0xc3   : > { %1546 = vmatpush3.bf16.msra.mxu0 %v1703_v28 }
  0xc4   : > { %1547 = vmatprep.subr.bf16.mxu0 %v1704_v29 }
  0xc7   : > { %1548 = vmatpush3.bf16.msra.mxu0 %v1704_v29 }
  0xc8   : > { %1549 = vmatprep.subr.bf16.mxu0 %v1705_v30 }
  0xcb   : > { %1550 = vmatpush3.bf16.msra.mxu0 %v1705_v30 }
  0xcc   : > { %1551 = vmatprep.subr.bf16.mxu0 %v1706_v31 }
  0xcf   : > { %1552 = vmatpush3.bf16.msra.mxu0 %v1706_v31 }
  0xd0   : > { %1553 = vmatprep.subr.bf16.mxu0 %v1707_v32 }
  0xd3   : > { %1554 = vmatpush3.bf16.msra.mxu0 %v1707_v32 }
  0xd4   : > { %1555 = vmatprep.subr.bf16.mxu0 %v1708_v33 }
  0xd7   : > { %1556 = vmatpush3.bf16.msra.mxu0 %v1708_v33 }
 0x175   : > { %v379_v35 = vpop.f32.mrb[0].mxu0 }
 0x176   : > { %v677_v36 = vmul.f32 %v2336_v34, %v379_v35  ;;  %v420_v37 = vpop.f32.mrb[0].mxu1  ;;  %v1497_v38 = vpop.f32.mrb[1].mxu0 }
 0x177   : > { %v679_v39 = vmul.f32 %v2336_v34, %v420_v37  ;;  %v1503_v40 = vpop.f32.mrb[1].mxu1  ;;  %v382_v41 = vpop.f32.mrb[2].mxu0 }
 0x178   : > { %v693_v43 = vadd.f32 %v677_v36, %v2259_v1  ;;  %v678_v44 = vmul.f32 %v2336_v34, %v382_v41  ;;  %v423_v45 = vpop.f32.mrb[2].mxu1  ;;  %v1498_v46 = vpop.f32.mrb[3].mxu0 }
 0x179   : > { %v695_v47 = vadd.f32 %v679_v39, %v2265_v3  ;;  %v680_v49 = vmul.f32 %v2336_v34, %v423_v45  ;;  %v1504_v50 = vpop.f32.mrb[3].mxu1 }
 0x17a   : > { %v694_v51 = vadd.f32 %v678_v44, %v2262_v2  ;;  %v2354_v54 = vadd.f32 %v693_v43, %v2340_v42 }
 0x17b   : > { %v2350_v52 = vadd.f32 %v695_v47, %v2340_v42  ;;  %v696_v53 = vadd.f32 %v680_v49, %v2270_v5 }
 0x17c   : > { %v2357_v55 = vadd.f32 %v694_v51, %v2345_v48 }
 0x17d   : > { %v2360_v56 = vadd.f32 %v696_v53, %v2345_v48  ;;  %v461_v57 = vpop.f32.mrb[4].mxu0 }
 0x17e   : > { %v681_v58 = vmul.f32 %v2336_v34, %v461_v57  ;;  %v502_v59 = vpop.f32.mrb[4].mxu1  ;;  %v1509_v60 = vpop.f32.mrb[5].mxu0  ;;  %v725_v61 = vpack.c.bf16 %v2357_v55, %v2354_v54 }
 0x17f   : > { %v726_v62 = vpack.c.bf16 %v2360_v56, %v2350_v52  ;;  %v683_v63 = vmul.f32 %v2336_v34, %v502_v59  ;;  %v1515_v0 = vpop.f32.mrb[5].mxu1  ;;  %v464_v1 = vpop.f32.mrb[6].mxu0 }
 0x180   : > { %v697_v2 = vadd.f32 %v681_v58, %v2275_v8  ;;  %v682_v3 = vmul.f32 %v2336_v34, %v464_v1  ;;  %v505_v4 = vpop.f32.mrb[6].mxu1  ;;  %v1510_v5 = vpop.f32.mrb[7].mxu0  ;;  %1557 = vmatprep.mubr.bf16.mxu0 %v725_v61 }
 0x181   : > { %v699_v6 = vadd.f32 %v683_v63, %v2283_v11  ;;  %v684_v7 = vmul.f32 %v2336_v34, %v505_v4  ;;  %v1516_v10 = vpop.f32.mrb[7].mxu1  ;;  %1558 = vmatmul.mubr.bf16.vlgmr.msra.gmra.mrb[16].mxu0 %v726_v62  ;;  %v1712_v5 = vld [vmem:[#allocation10 + $0x18] sm:$0xff]  }
 0x182   : > { %v698_v13 = vadd.f32 %v682_v3, %v2278_v9  ;;  %v2378_v8 = vadd.f32 %v697_v2, %v2340_v42  ;;  %v1716_v10 = vld [vmem:[#allocation10 + $0x38] sm:$0xff]  }
 0x183   : > { %v2374_v18 = vadd.f32 %v699_v6, %v2340_v42  ;;  %v700_v19 = vadd.f32 %v684_v7, %v2286_v12  ;;  %v1714_v6 = vld [vmem:[#allocation10 + $0x28] sm:$0xff]   ;;  %v1715_v7 = vld [vmem:[#allocation10 + $0x30] sm:$0xff]  }
 0x184   : > { %v2381_v24 = vadd.f32 %v698_v13, %v2345_v48  ;;  %v2438_v13 = vld [vmem:[#allocation7 + $0x12] ss:$0 sm:$0xff] }
 0x185   : > { %v2384_v25 = vadd.f32 %v700_v19, %v2345_v48  ;;  %v543_v11 = vpop.f32.mrb[8].mxu0 }
 0x186   : > { %v685_v26 = vmul.f32 %v2336_v34, %v543_v11  ;;  %v584_v27 = vpop.f32.mrb[8].mxu1  ;;  %v1521_v28 = vpop.f32.mrb[9].mxu0  ;;  %v727_v9 = vpack.c.bf16 %v2381_v24, %v2378_v8 }
 0x187   : > { %v687_v29 = vmul.f32 %v2336_v34, %v584_v27  ;;  %v1527_v12 = vpop.f32.mrb[9].mxu1  ;;  %v546_v30 = vpop.f32.mrb[10].mxu0  ;;  %v728_v31 = vpack.c.bf16 %v2384_v25, %v2374_v18 }
 0x188   : > { %v701_v32 = vadd.f32 %v685_v26, %v2292_v14  ;;  %v686_v33 = vmul.f32 %v2336_v34, %v546_v30  ;;  %v587_v35 = vpop.f32.mrb[10].mxu1  ;;  %v1522_v36 = vpop.f32.mrb[11].mxu0  ;;  %1561 = vmatprep.mubr.bf16.mxu0 %v727_v9 }
 0x189   : > { %v703_v37 = vadd.f32 %v687_v29, %v2300_v16  ;;  %v688_v38 = vmul.f32 %v2336_v34, %v587_v35  ;;  %v1528_v39 = vpop.f32.mrb[11].mxu1  ;;  %1562 = vmatmul.mubr.bf16.gmra.mrb[20].mxu0 %v728_v31 }
 0x18a   : > { %v702_v40 = vadd.f32 %v686_v33, %v2296_v15  ;;  %v2402_v14 = vadd.f32 %v701_v32, %v2340_v42 }
 0x18b   : > { %v2398_v41 = vadd.f32 %v703_v37, %v2340_v42  ;;  %v704_v43 = vadd.f32 %v688_v38, %v2304_v17 }
 0x18c   : > { %v2405_v44 = vadd.f32 %v702_v40, %v2345_v48 }
 0x18d   : > { %v2408_v45 = vadd.f32 %v704_v43, %v2345_v48  ;;  %v625_v16 = vpop.f32.mrb[12].mxu0 }
 0x18e   : > { %v689_v46 = vmul.f32 %v2336_v34, %v625_v16  ;;  %v666_v47 = vpop.f32.mrb[12].mxu1  ;;  %v1533_v49 = vpop.f32.mrb[13].mxu0  ;;  %v729_v15 = vpack.c.bf16 %v2405_v44, %v2402_v14 }
 0x18f   : > { %v691_v50 = vmul.f32 %v2336_v34, %v666_v47  ;;  %v1539_v17 = vpop.f32.mrb[13].mxu1  ;;  %v628_v51 = vpop.f32.mrb[14].mxu0  ;;  %v730_v53 = vpack.c.bf16 %v2408_v45, %v2398_v41 }
 0x190   : > { %v705_v57 = vadd.f32 %v689_v46, %v2312_v20  ;;  %v690_v58 = vmul.f32 %v2336_v34, %v628_v51  ;;  %v669_v59 = vpop.f32.mrb[14].mxu1  ;;  %v1534_v60 = vpop.f32.mrb[15].mxu0  ;;  %1565 = vmatprep.mubr.bf16.mxu0 %v729_v15 }
 0x191   : > { %v707_v61 = vadd.f32 %v691_v50, %v2319_v22  ;;  %v692_v62 = vmul.f32 %v2336_v34, %v669_v59  ;;  %v1540_v63 = vpop.f32.mrb[15].mxu1  ;;  %1566 = vmatmul.mubr.bf16.gmra.mrb[24].mxu0 %v730_v53  ;;  %v1709_v34 = vld [vmem:[#allocation10] sm:$0xff]  }
 0x192   : > { %v706_v0 = vadd.f32 %v690_v58, %v2315_v21  ;;  %v2426_v20 = vadd.f32 %v705_v57, %v2340_v42  ;;  %1573 = vmatprep.subr.bf16.mxu1 %v1709_v34 }
 0x193   : > { %v2422_v1 = vadd.f32 %v707_v61, %v2340_v42  ;;  %v708_v2 = vadd.f32 %v692_v62, %v2322_v23  ;;  %1574 = vmatpush3.bf16.msra.mxu1 %v1709_v34  ;;  %v1710_v23 = vld [vmem:[#allocation10 + $0x8] sm:$0xff]   ;;  %v1711_v42 = vld [vmem:[#allocation10 + $0x10] sm:$0xff]  }
 0x194   : > { %v2429_v3 = vadd.f32 %v706_v0, %v2345_v48  ;;  %1575 = vmatprep.subr.bf16.mxu1 %v1710_v23 }
 0x195   : > { %v2432_v4 = vadd.f32 %v708_v2, %v2345_v48  ;;  %v1713_v48 = vld [vmem:[#allocation10 + $0x20] sm:$0xff]  }
 0x196   : > { %v731_v22 = vpack.c.bf16 %v2429_v3, %v2426_v20 }
 0x197   : > { %v732_v21 = vpack.c.bf16 %v2432_v4, %v2422_v1  ;;  %1576 = vmatpush3.bf16.msra.mxu1 %v1710_v23 }
 0x198   : > { %1569 = vmatprep.mubr.bf16.mxu0 %v731_v22  ;;  %1577 = vmatprep.subr.bf16.mxu1 %v1711_v42 }
 0x199   : > { %1570 = vmatmul.mubr.bf16.gmra.mrb[28].mxu0 %v732_v21 }
 0x19b   : > { %1578 = vmatpush3.bf16.msra.mxu1 %v1711_v42 }
 0x19c   : > { %1579 = vmatprep.subr.bf16.mxu1 %v1712_v5 }
 0x19f   : > { %1580 = vmatpush3.bf16.msra.mxu1 %v1712_v5 }
 0x1a0   : > { %1581 = vmatprep.subr.bf16.mxu1 %v1713_v48 }
 0x1a3   : > { %1582 = vmatpush3.bf16.msra.mxu1 %v1713_v48 }
 0x1a4   : > { %1583 = vmatprep.subr.bf16.mxu1 %v1714_v6 }
 0x1a7   : > { %1584 = vmatpush3.bf16.msra.mxu1 %v1714_v6 }
 0x1a8   : > { %1585 = vmatprep.subr.bf16.mxu1 %v1715_v7 }
 0x1ab   : > { %1586 = vmatpush3.bf16.msra.mxu1 %v1715_v7 }
 0x1ac   : > { %1587 = vmatprep.subr.bf16.mxu1 %v1716_v10 }
 0x1af   : > { %1588 = vmatpush3.bf16.msra.mxu1 %v1716_v10 }
 0x254   : > { %v1559_v19 = vpop.f32.mrb[16].mxu0 }
 0x255   : > { %v844_v11 = vadd.f32 %v1559_v19, %v2438_v13  ;;  %v835_v26 = vpop.f32.mrb[17].mxu0 }
 0x256   : > { %v836_v27 = vadd.f32 %v2438_v13, %v835_v26  ;;  %v1560_v28 = vpop.f32.mrb[18].mxu0 }
 0x257   : > { %v916_v9 = vmul.f32 0.044715, %v844_v11  ;;  %v2443_v29 = vadd.f32 %v1560_v28, %v2438_v13  ;;  %v838_v12 = vpop.f32.mrb[19].mxu0 }
 0x258   : > { %v914_v30 = vmul.f32 0.044715, %v836_v27  ;;  %v2446_v31 = vadd.f32 %v2438_v13, %v838_v12 }
 0x259   : > { %v932_v32 = vmul.f32 %v916_v9, %v844_v11  ;;  %v917_v33 = vmul.f32 0.044715, %v2443_v29  ;;  %v900_v9 = vmul.f32 0.5, %v844_v11 }
 0x25a   : > { %v930_v35 = vmul.f32 %v914_v30, %v836_v27  ;;  %v915_v36 = vmul.f32 0.044715, %v2446_v31 }
 0x25b   : > { %v948_v37 = vmul.f32 %v932_v32, %v844_v11  ;;  %v933_v38 = vmul.f32 %v917_v33, %v2443_v29 }
 0x25c   : > { %v946_v39 = vmul.f32 %v930_v35, %v836_v27  ;;  %v931_v40 = vmul.f32 %v915_v36, %v2446_v31  ;;  %v1563_v43 = vpop.f32.mrb[20].mxu0 }
 0x25d   : > { %v964_v16 = vadd.f32 %v948_v37, %v844_v11  ;;  %v949_v46 = vmul.f32 %v933_v38, %v2443_v29  ;;  %v2454_v47 = vadd.f32 %v1563_v43, %v2438_v13  ;;  %v851_v49 = vpop.f32.mrb[21].mxu0 }
 0x25e   : > { %v947_v15 = vmul.f32 %v931_v40, %v2446_v31  ;;  %v852_v50 = vadd.f32 %v2438_v13, %v851_v49  ;;  %v1564_v17 = vpop.f32.mrb[22].mxu0  ;;  %v962_v51 = vadd.f32 %v946_v39, %v836_v27  ;;  %v898_v39 = vmul.f32 0.5, %v836_v27 }
 0x25f   : > { %v980_v53 = vmul.f32 0.7978846, %v964_v16  ;;  %v965_v57 = vadd.f32 %v949_v46, %v2443_v29  ;;  %v920_v58 = vmul.f32 0.044715, %v2454_v47  ;;  %v2461_v59 = vadd.f32 %v1564_v17, %v2438_v13  ;;  %v854_v60 = vpop.f32.mrb[23].mxu0 }
 0x260   : > { %v918_v61 = vmul.f32 0.044715, %v852_v50  ;;  %v2464_v62 = vadd.f32 %v2438_v13, %v854_v60  ;;  %v963_v63 = vadd.f32 %v947_v15, %v2446_v31  ;;  %v978_v0 = vmul.f32 0.7978846, %v962_v51 }
 0x261   : > { %1717 = vtanh.f32 %v980_v53  ;;  %v981_v2 = vmul.f32 0.7978846, %v965_v57  ;;  %v936_v22 = vmul.f32 %v920_v58, %v2454_v47  ;;  %v921_v21 = vmul.f32 0.044715, %v2461_v59 }
 0x262   : > { %v934_v34 = vmul.f32 %v918_v61, %v852_v50  ;;  %v919_v23 = vmul.f32 0.044715, %v2464_v62  ;;  %v979_v42 = vmul.f32 0.7978846, %v963_v63  ;;  %1719 = vtanh.f32 %v978_v0 }
 0x263   : > { %1721 = vtanh.f32 %v981_v2  ;;  %v952_v5 = vmul.f32 %v936_v22, %v2454_v47  ;;  %v937_v48 = vmul.f32 %v921_v21, %v2461_v59  ;;  %v899_v61 = vmul.f32 0.5, %v2446_v31 }
 0x264   : > { %v950_v6 = vmul.f32 %v934_v34, %v852_v50  ;;  %v935_v7 = vmul.f32 %v919_v23, %v2464_v62  ;;  %v1567_v10 = vpop.f32.mrb[24].mxu0  ;;  %1723 = vtanh.f32 %v979_v42  ;;  %v901_v63 = vmul.f32 0.5, %v2443_v29 }
 0x265   : > { %v953_v19 = vmul.f32 %v937_v48, %v2461_v59  ;;  %v2475_v26 = vadd.f32 %v1567_v10, %v2438_v13  ;;  %v867_v28 = vpop.f32.mrb[25].mxu0  ;;  %v968_v35 = vadd.f32 %v952_v5, %v2454_v47  ;;  %v902_v34 = vmul.f32 0.5, %v852_v50 }
 0x266   : > { %v951_v12 = vmul.f32 %v935_v7, %v2464_v62  ;;  %v2479_v30 = vadd.f32 %v2438_v13, %v867_v28  ;;  %v1568_v32 = vpop.f32.mrb[26].mxu0  ;;  %v966_v33 = vadd.f32 %v950_v6, %v852_v50 }
 0x267   : > { %v924_v36 = vmul.f32 0.044715, %v2475_v26  ;;  %v2484_v37 = vadd.f32 %v1568_v32, %v2438_v13  ;;  %v870_v38 = vpop.f32.mrb[27].mxu0  ;;  %v969_v40 = vadd.f32 %v953_v19, %v2461_v59  ;;  %v984_v17 = vmul.f32 0.7978846, %v968_v35 }
 0x268   : > { %v922_v11 = vmul.f32 0.044715, %v2479_v30  ;;  %v2489_v43 = vadd.f32 %v2438_v13, %v870_v38  ;;  %v967_v16 = vadd.f32 %v951_v12, %v2464_v62  ;;  %v982_v46 = vmul.f32 0.7978846, %v966_v33 }
 0x269   : > { %v940_v49 = vmul.f32 %v924_v36, %v2475_v26  ;;  %v925_v15 = vmul.f32 0.044715, %v2484_v37  ;;  %v985_v51 = vmul.f32 0.7978846, %v969_v40 }
 0x26a   : > { %v938_v53 = vmul.f32 %v922_v11, %v2479_v30  ;;  %v923_v27 = vmul.f32 0.044715, %v2489_v43  ;;  %v983_v57 = vmul.f32 0.7978846, %v967_v16  ;;  %1725 = vtanh.f32 %v982_v46 }
 0x26b   : > { %v1718_v58 = vpop.eup %1717  ;;  %v941_v60 = vmul.f32 %v925_v15, %v2484_v37  ;;  %1727 = vtanh.f32 %v984_v17  ;;  %v956_v29 = vmul.f32 %v940_v49, %v2475_v26 }
 0x26c   : > { %v1720_v0 = vpop.eup %1719  ;;  %v939_v2 = vmul.f32 %v923_v27, %v2489_v43  ;;  %v1571_v22 = vpop.f32.mrb[28].mxu0  ;;  %v1012_v21 = vadd.f32 1.0, %v1718_v58  ;;  %1729 = vtanh.f32 %v983_v57  ;;  %v954_v42 = vmul.f32 %v938_v53, %v2479_v30 }
 0x26d   : > { %v1722_v23 = vpop.eup %1721  ;;  %v2502_v5 = vadd.f32 %v1571_v22, %v2438_v13  ;;  %v883_v48 = vpop.f32.mrb[29].mxu0  ;;  %v1010_v6 = vadd.f32 1.0, %v1720_v0  ;;  %1731 = vtanh.f32 %v985_v51  ;;  %v957_v28 = vmul.f32 %v941_v60, %v2484_v37 }
 0x26e   : > { %v1724_v31 = vpop.eup %1723  ;;  %v955_v7 = vmul.f32 %v939_v2, %v2489_v43  ;;  %v2507_v10 = vadd.f32 %v2438_v13, %v883_v48  ;;  %v1572_v19 = vpop.f32.mrb[30].mxu0  ;;  %v1013_v50 = vadd.f32 1.0, %v1722_v23  ;;  %v1028_v40 = vmul.f32 %v1012_v21, %v900_v9 }
 0x26f   : > { %v928_v12 = vmul.f32 0.044715, %v2502_v5  ;;  %v2512_v32 = vadd.f32 %v1572_v19, %v2438_v13  ;;  %v886_v33 = vpop.f32.mrb[31].mxu0  ;;  %v1011_v35 = vadd.f32 1.0, %v1724_v31  ;;  %v1026_v46 = vmul.f32 %v1010_v6, %v898_v39 }
 0x270   : > { %v926_v36 = vmul.f32 0.044715, %v2507_v10  ;;  %v2516_v38 = vadd.f32 %v2438_v13, %v886_v33  ;;  %v1029_v11 = vmul.f32 %v1013_v50, %v901_v63  ;;  %v970_v15 = vadd.f32 %v954_v42, %v2479_v30 }
 0x271   : > { %v929_v16 = vmul.f32 0.044715, %v2512_v32  ;;  %v1027_v49 = vmul.f32 %v1011_v35, %v899_v61  ;;  %v971_v27 = vadd.f32 %v955_v7, %v2489_v43  ;;  %v944_v57 = vmul.f32 %v928_v12, %v2502_v5 }
 0x272   : > { %v942_v17 = vmul.f32 %v926_v36, %v2507_v10  ;;  %v927_v51 = vmul.f32 0.044715, %v2516_v38  ;;  %v1043_v53 = vpack.c.bf16 %v1029_v11, %v1028_v40  ;;  %v903_v13 = vmul.f32 0.5, %v2464_v62 }
 0x273   : > { %v1042_v58 = vpack.c.bf16 %v1027_v49, %v1026_v46  ;;  %v986_v9 = vmul.f32 0.7978846, %v970_v15  ;;  %v945_v63 = vmul.f32 %v929_v16, %v2512_v32  ;;  %v904_v61 = vmul.f32 0.5, %v2454_v47 }
 0x274   : > { %v1726_v60 = vpop.eup %1725  ;;  %v943_v39 = vmul.f32 %v927_v51, %v2516_v38  ;;  %v987_v0 = vmul.f32 0.7978846, %v971_v27  ;;  %v958_v22 = vmul.f32 %v942_v17, %v2507_v10  ;;  %v972_v23 = vadd.f32 %v956_v29, %v2475_v26 }
 0x275   : > { %v1728_v2 = vpop.eup %1727  ;;  %1589 = vmatprep.mubr.bf16.mxu1 %v1042_v58  ;;  %v1014_v21 = vadd.f32 1.0, %v1726_v60  ;;  %1733 = vtanh.f32 %v986_v9  ;;  %v973_v6 = vadd.f32 %v957_v28, %v2484_v37  ;;  %v960_v47 = vmul.f32 %v944_v57, %v2502_v5 }
 0x276   : > { %v1730_v42 = vpop.eup %1729  ;;  %v959_v62 = vmul.f32 %v943_v39, %v2516_v38  ;;  %1590 = vmatmul.mubr.bf16.vlgmr.msra.gmra.mrb[16].mxu1 %v1043_v53  ;;  %v1016_v48 = vadd.f32 1.0, %v1728_v2  ;;  %1735 = vtanh.f32 %v987_v0  ;;  %v905_v19 = vmul.f32 0.5, %v2461_v59 }
 0x277   : > { %v1732_v31 = vpop.eup %1731  ;;  %v1015_v7 = vadd.f32 1.0, %v1730_v42  ;;  %v988_v50 = vmul.f32 0.7978846, %v972_v23  ;;  %v961_v12 = vmul.f32 %v945_v63, %v2512_v32  ;;  %v1030_v33 = vmul.f32 %v1014_v21, %v902_v34 }
 0x278   : > { %v1017_v35 = vadd.f32 1.0, %v1732_v31  ;;  %v989_v29 = vmul.f32 0.7978846, %v973_v6  ;;  %v974_v40 = vadd.f32 %v958_v22, %v2507_v10  ;;  %v975_v11 = vadd.f32 %v959_v62, %v2516_v38 }
 0x279   : > { %v1031_v36 = vmul.f32 %v1015_v7, %v903_v13  ;;  %1737 = vtanh.f32 %v988_v50  ;;  %v1032_v16 = vmul.f32 %v1016_v48, %v904_v61  ;;  %v976_v59 = vadd.f32 %v960_v47, %v2502_v5 }
 0x27a   : > { %v1033_v28 = vmul.f32 %v1017_v35, %v905_v19  ;;  %1739 = vtanh.f32 %v989_v29  ;;  %v990_v49 = vmul.f32 0.7978846, %v974_v40  ;;  %v991_v15 = vmul.f32 0.7978846, %v975_v11 }
 0x27b   : > { %v1044_v46 = vpack.c.bf16 %v1031_v36, %v1030_v33  ;;  %v977_v51 = vadd.f32 %v961_v12, %v2512_v32  ;;  %v992_v34 = vmul.f32 0.7978846, %v976_v59  ;;  %v906_v13 = vmul.f32 0.5, %v2479_v30 }
 0x27c   : > { %v1045_v17 = vpack.c.bf16 %v1033_v28, %v1032_v16  ;;  %1741 = vtanh.f32 %v990_v49  ;;  %v907_v9 = vmul.f32 0.5, %v2489_v43  ;;  %v908_v21 = vmul.f32 0.5, %v2475_v26 }
 0x27d   : > { %1593 = vmatprep.mubr.bf16.mxu1 %v1044_v46  ;;  %1743 = vtanh.f32 %v991_v15  ;;  %v993_v53 = vmul.f32 0.7978846, %v977_v51  ;;  %v909_v23 = vmul.f32 0.5, %v2484_v37  ;;  %v910_v7 = vmul.f32 0.5, %v2507_v10  ;;  %v2547_v10 = vld [vmem:[#allocation7 + $0x11] ss:$0 sm:$0xff] }
 0x27e   : > { %1594 = vmatmul.mubr.bf16.gmra.mrb[20].mxu1 %v1045_v17  ;;  %1745 = vtanh.f32 %v992_v34  ;;  %v911_v19 = vmul.f32 0.5, %v2516_v38  ;;  %v912_v33 = vmul.f32 0.5, %v2502_v5  ;;  %v913_v29 = vmul.f32 0.5, %v2512_v32 }
 0x27f   : > { %v1734_v27 = vpop.eup %1733  ;;  %1747 = vtanh.f32 %v993_v53 }
 0x280   : > { %v1736_v57 = vpop.eup %1735  ;;  %v1018_v58 = vadd.f32 1.0, %v1734_v27 }
 0x281   : > { %v1019_v60 = vadd.f32 1.0, %v1736_v57 }
 0x282   : > { %v1034_v39 = vmul.f32 %v1018_v58, %v906_v13 }
 0x283   : > { %v1738_v63 = vpop.eup %1737  ;;  %v1035_v61 = vmul.f32 %v1019_v60, %v907_v9 }
 0x284   : > { %v1740_v0 = vpop.eup %1739  ;;  %v1020_v2 = vadd.f32 1.0, %v1738_v63 }
 0x285   : > { %v1046_v22 = vpack.c.bf16 %v1035_v61, %v1034_v39  ;;  %v1021_v42 = vadd.f32 1.0, %v1740_v0 }
 0x286   : > { %v1742_v62 = vpop.eup %1741  ;;  %v1036_v48 = vmul.f32 %v1020_v2, %v908_v21 }
 0x287   : > { %1597 = vmatprep.mubr.bf16.mxu1 %v1046_v22  ;;  %v1037_v6 = vmul.f32 %v1021_v42, %v909_v23  ;;  %v1744_v31 = vpop.eup %1743  ;;  %v1022_v30 = vadd.f32 1.0, %v1742_v62 }
 0x288   : > { %v1746_v47 = vpop.eup %1745  ;;  %v1023_v50 = vadd.f32 1.0, %v1744_v31 }
 0x289   : > { %v1047_v43 = vpack.c.bf16 %v1037_v6, %v1036_v48  ;;  %v1748_v12 = vpop.eup %1747  ;;  %v1024_v26 = vadd.f32 1.0, %v1746_v47  ;;  %v1038_v37 = vmul.f32 %v1022_v30, %v910_v7 }
 0x28a   : > { %v1039_v35 = vmul.f32 %v1023_v50, %v911_v19  ;;  %v1025_v36 = vadd.f32 1.0, %v1748_v12 }
 0x28b   : > { %1598 = vmatmul.mubr.bf16.gmra.mrb[24].mxu1 %v1047_v43  ;;  %v1040_v11 = vmul.f32 %v1024_v26, %v912_v33 }
 0x28c   : > { %v1048_v40 = vpack.c.bf16 %v1039_v35, %v1038_v37  ;;  %v1041_v16 = vmul.f32 %v1025_v36, %v913_v29 }
 0x28e   : > { %1601 = vmatprep.mubr.bf16.mxu1 %v1048_v40  ;;  %v1049_v28 = vpack.c.bf16 %v1041_v16, %v1040_v11 }
 0x293   : > { %1602 = vmatmul.mubr.bf16.gmra.mrb[28].mxu1 %v1049_v28 }
 0x349   : > { %v1591_v38 = vpop.f32.mrb[16].mxu1 }
 0x34a   : > { %v1213_v46 = vadd.f32 %v1591_v38, %v2350_v52  ;;  %v1148_v5 = vpop.f32.mrb[17].mxu1 }
 0x34b   : > { %v1211_v49 = vadd.f32 %v1148_v5, %v2354_v54  ;;  %v1592_v15 = vpop.f32.mrb[18].mxu1 }
 0x34c   : > { %v1233_v59 = vadd.f32 %v2547_v10, %v1213_v46  ;;  %v1214_v32 = vadd.f32 %v1592_v15, %v2360_v56  ;;  %v1151_v17 = vpop.f32.mrb[19].mxu1 }
 0x34d   : > { %v1231_v51 = vadd.f32 %v2547_v10, %v1211_v49  ;;  %v1212_v34 = vadd.f32 %v1151_v17, %v2357_v55 }
 0x34e   : > { %1249 = vst [vmem:[%s2557_s24 + $0x10] sm:$0xff] %v1233_v59  ;;  %v1234_v52 = vadd.f32 %v2547_v10, %v1214_v32 }
 0x34f   : > { %1247 = vst [vmem:[%s2557_s24] sm:$0xff] %v1231_v51  ;;  %v1232_v54 = vadd.f32 %v2547_v10, %v1212_v34 }
 0x350   : > { %1250 = vst [vmem:[%s2557_s24 + $0x18] sm:$0xff] %v1234_v52 }
 0x351   : > { %1248 = vst [vmem:[%s2557_s24 + $0x8] sm:$0xff] %v1232_v54  ;;  %v1595_v55 = vpop.f32.mrb[20].mxu1 }
 0x352   : > { %v1217_v56 = vadd.f32 %v1595_v55, %v2374_v18  ;;  %v1164_v53 = vpop.f32.mrb[21].mxu1 }
 0x353   : > { %v1215_v27 = vadd.f32 %v1164_v53, %v2378_v8  ;;  %v1596_v57 = vpop.f32.mrb[22].mxu1 }
 0x354   : > { %v1237_v58 = vadd.f32 %v2547_v10, %v1217_v56  ;;  %v1218_v13 = vadd.f32 %v1596_v57, %v2384_v25  ;;  %v1167_v9 = vpop.f32.mrb[23].mxu1 }
 0x355   : > { %v1235_v60 = vadd.f32 %v2547_v10, %v1215_v27  ;;  %v1216_v63 = vadd.f32 %v1167_v9, %v2381_v24 }
 0x356   : > { %1253 = vst [vmem:[%s2557_s24 + $0x30] sm:$0xff] %v1237_v58  ;;  %v1238_v39 = vadd.f32 %v2547_v10, %v1218_v13 }
 0x357   : > { %1251 = vst [vmem:[%s2557_s24 + $0x20] sm:$0xff] %v1235_v60  ;;  %v1236_v18 = vadd.f32 %v2547_v10, %v1216_v63 }
 0x358   : > { %1254 = vst [vmem:[%s2557_s24 + $0x38] sm:$0xff] %v1238_v39 }
 0x359   : > { %1252 = vst [vmem:[%s2557_s24 + $0x28] sm:$0xff] %v1236_v18 }
 0x35e   : > { %v1599_v8 = vpop.f32.mrb[24].mxu1 }
 0x35f   : > { %v1221_v25 = vadd.f32 %v1599_v8, %v2398_v41  ;;  %v1180_v61 = vpop.f32.mrb[25].mxu1 }
 0x360   : > { %v1219_v0 = vadd.f32 %v1180_v61, %v2402_v14  ;;  %v1600_v2 = vpop.f32.mrb[26].mxu1 }
 0x361   : > { %v1241_v24 = vadd.f32 %v2547_v10, %v1221_v25  ;;  %v1222_v22 = vadd.f32 %v1600_v2, %v2408_v45  ;;  %v1183_v21 = vpop.f32.mrb[27].mxu1 }
 0x362   : > { %v1239_v23 = vadd.f32 %v2547_v10, %v1219_v0  ;;  %v1220_v42 = vadd.f32 %v1183_v21, %v2405_v44 }
 0x363   : > { %1257 = vst [vmem:[%s2557_s24 + $0x50] sm:$0xff] %v1241_v24  ;;  %v1242_v62 = vadd.f32 %v2547_v10, %v1222_v22 }
 0x364   : > { %1255 = vst [vmem:[%s2557_s24 + $0x40] sm:$0xff] %v1239_v23  ;;  %v1240_v41 = vadd.f32 %v2547_v10, %v1220_v42 }
 0x365   : > { %1258 = vst [vmem:[%s2557_s24 + $0x58] sm:$0xff] %v1242_v62 }
 0x366   : > { %1256 = vst [vmem:[%s2557_s24 + $0x48] sm:$0xff] %v1240_v41  ;;  %v1603_v14 = vpop.f32.mrb[28].mxu1 }
 0x367   : > { %v1225_v48 = vadd.f32 %v1603_v14, %v2422_v1  ;;  %v1196_v45 = vpop.f32.mrb[29].mxu1 }
 0x368   : > { %v1223_v6 = vadd.f32 %v1196_v45, %v2426_v20  ;;  %v1604_v31 = vpop.f32.mrb[30].mxu1 }
 0x369   : > { %v1245_v44 = vadd.f32 %v2547_v10, %v1225_v48  ;;  %v1226_v30 = vadd.f32 %v1604_v31, %v2432_v4  ;;  %v1199_v47 = vpop.f32.mrb[31].mxu1 }
 0x36a   : > { %v1243_v43 = vadd.f32 %v2547_v10, %v1223_v6  ;;  %v1224_v7 = vadd.f32 %v1199_v47, %v2429_v3 }
 0x36b   : > { %1261 = vst [vmem:[%s2557_s24 + $0x70] sm:$0xff] %v1245_v44  ;;  %v1246_v1 = vadd.f32 %v2547_v10, %v1226_v30 }
 0x36c   : > { %1259 = vst [vmem:[%s2557_s24 + $0x60] sm:$0xff] %v1243_v43  ;;  %v1244_v20 = vadd.f32 %v2547_v10, %v1224_v7 }
 0x36d   : > { %1262 = vst [vmem:[%s2557_s24 + $0x78] sm:$0xff] %v1246_v1 }
 0x36e   : > { %1260 = vst [vmem:[%s2557_s24 + $0x68] sm:$0xff] %v1244_v20 }
 0x36f   : > { %1904 = shalt.err (!%p1901_p12)
}
 0x370   : > { %s1905_s7 = scalar_lea.hbm %s2602_s17, 2048  ;;  %s1909_s9 = scalar_lea.hbm %s2656_s5, 8192 }
 0x371   : > { %p1906_p9 = scmp.ne.s32.totalorder %s2602_s17, %s1905_s7  ;;  %p1910_p4 = scmp.lt.u32.totalorder %s2602_s17, %s2656_s5 }
 0x372   : > { %p1911_p8 = scmp.lt.u32.totalorder %s1909_s9, %s1905_s7  ;;  %p1913_p3 = scmp.lt.u32.totalorder %s1905_s7, %s2602_s17 }
 0x373   : > { %p1907_p13 = pnand %p1906_p9, %p2181_p0 }
 0x374   : > { %p1912_p6 = por %p1911_p8, %p1910_p4 }
 0x375   : > { %p1908_p10 = pneg %p1907_p13 }
 0x376   : > { %p1914_p5 = por %p1913_p3, %p1912_p6 }
 0x378   : > { %p1915_p7 = pnand %p1914_p5, %p1908_p10 }
 0x37a   : > { %1918 = shalt.err (!%p1915_p7)
}
 0x37b   : > { %s1979_s26 = smov 128   ;;  %s1980_s28 = smov 8  }
 0x37c   : > { %1623 = dma.vmem_to_hbm [thread:$0]  (%p2181_p0), %s2604_s6, 2048, %s2602_s17, %s1264_s22, %s1979_s26, %s1979_s26, %s1980_s28  }
 0x37d PF: > { %p1655_p11 = scmp.ge.s32.totalorder %s1965_s21, 2  ;;  %s1293_s16 = sand.u32 1, %s1953_s18  }
 0x37e   : > { %p2676_p1 = scmp.ne.s32.totalorder %s2662_s25, 0  ;;  %s1294_s30 = scalar_lea.sflag [#allocation4], %s1293_s16 }
 0x380   : > { %p1643_p2 = pnand %p1655_p11, %p2676_p1 }
 0x382   : > { %1948 = dma.done.wait (!%p1643_p2), %s1294_s30, 2048  }
 0x383   : > { %1950 = vsyncadd (!%p1643_p2), %s1294_s30, 4294965248  ;;  %p20_p12 = scmp.ge.s32.totalorder %s2171_s14, 6   ;;  %s2677_s18 = smov %s1957_s19 }
 0x384   : > { %s2678_s19 = smov %s1961_s20  ;;  %s2679_s20 = smov %s2187_s11 }
 0x385   : > { %s2680_s21 = smov %s2171_s14  ;;  %22 = sbr.rel (!%p20_p12) target bundleno = 7 (0x7), region = 101 }
 0x38c   :  { %1299 = vsyncpa [#allocation3], 1 }
 0x38d   :  { %1301 = vsyncpa [#allocation3 + $0x1], 1 }
 0x38e   :  { %1302 = vsyncpa [#allocation6], 1 }
 0x38f   :  { %1303 = vsyncpa [#allocation9], 1 }
 0x390   :  { %1304 = vsyncpa [#allocation4], 1 }
 0x391   :  { %1306 = vsyncpa [#allocation4 + $0x1], 1 }

</bundles_post_ra>
